<compile_context>
chip_gen: v6e
topology: v6e:2x2x1
jax: 0.10.0
libtpu: 0.0.40
codegen_flags: <defaults>
</compile_context>

<pallas_src>
import jax
import jax.numpy as jnp
from jax.experimental import pallas as pl
from jax.experimental.pallas import tpu as pltpu


def _round_up(x, m):
    return ((x + m - 1) // m) * m


def _cdiv(a, b):
    return (a + b - 1) // b


# ---------------------------------------------------------------------------
# Kernels
# ---------------------------------------------------------------------------

def _softmax_epilogue(logits, probs_ref, logp_ref):
    """Numerically stable log_softmax + softmax over the lane axis.

    softmax(log_softmax(x)) == exp(shifted) / sum(exp(shifted)), so a single
    max/exp/sum pass suffices.
    """
    m = jnp.max(logits, axis=-1, keepdims=True)
    shifted = logits - m
    e = jnp.exp(shifted)
    sum_e = jnp.sum(e, axis=-1, keepdims=True)
    log_probs = shifted - jnp.log(sum_e)
    # EUP approximate reciprocal + one Newton-Raphson step (-> ~f32 exact, and
    # it is only a (tm, 1) column so the refinement is essentially free).
    inv = pl.reciprocal(sum_e, approx=True)
    inv = inv * (2.0 - sum_e * inv)
    probs_ref[...] = (e * inv).astype(probs_ref.dtype)
    logp_ref[...] = log_probs.astype(logp_ref.dtype)


def _dot_xwT(x, w):
    # x: (tm, tk), w: (N, tk) -> (tm, N).  F.linear == x @ W^T; contracting the
    # lane axis of both operands keeps the weight in its native (N, K) layout
    # (no transpose copy in the wrapper) and is MXU-legal.
    return jax.lax.dot_general(
        x, w,
        dimension_numbers=(((1,), (1,)), ((), ())),
        preferred_element_type=jnp.float32,
    )


def _stationary_kernel(x_ref, w_ref, probs_ref, logp_ref):
    # Whole weight resident in VMEM (constant index_map -> fetched once).
    _softmax_epilogue(_dot_xwT(x_ref[...], w_ref[...]), probs_ref, logp_ref)


def _ktiled_kernel_acc_in_out(x_ref, w_ref, probs_ref, logp_ref):
    # out_dtype == f32: accumulate the logits directly in the log-prob output
    # block, which stays VMEM-resident across the K axis (its index_map
    # ignores k).  Saves a (tm, N) f32 scratch and a zero-fill per row tile.
    k = pl.program_id(1)
    contrib = _dot_xwT(x_ref[...], w_ref[...])

    @pl.when(k == 0)
    def _():
        logp_ref[...] = contrib

    @pl.when(k > 0)
    def _():
        logp_ref[...] += contrib

    @pl.when(k == pl.num_programs(1) - 1)
    def _():
        _softmax_epilogue(logp_ref[...], probs_ref, logp_ref)


def _ktiled_kernel_scratch(x_ref, w_ref, probs_ref, logp_ref, acc_ref):
    # Generic out_dtype variant: f32 accumulator scratch.
    k = pl.program_id(1)
    contrib = _dot_xwT(x_ref[...], w_ref[...])

    @pl.when(k == 0)
    def _():
        acc_ref[...] = contrib

    @pl.when(k > 0)
    def _():
        acc_ref[...] += contrib

    @pl.when(k == pl.num_programs(1) - 1)
    def _():
        _softmax_epilogue(acc_ref[...], probs_ref, logp_ref)


# ---------------------------------------------------------------------------
# Wrapper
# ---------------------------------------------------------------------------

def linear_softmax(feature_in, feature_weight, *, tm=None, tk=None, out_dtype=None):
    """feature_in: (M, K); feature_weight: (N, K) (PyTorch nn.Linear layout).

    Returns (probs, log_probs), both (M, N).  out_dtype defaults to the input
    dtype; pass jnp.bfloat16 to halve output HBM writeback / VMEM footprint.
    """
    M, K = feature_in.shape
    N, Kw = feature_weight.shape
    assert K == Kw, "in-feature dims must match"
    if out_dtype is None:
        out_dtype = feature_in.dtype
    out_dtype = jnp.dtype(out_dtype)

    x_bytes = jnp.dtype(feature_in.dtype).itemsize
    w_bytes = jnp.dtype(feature_weight.dtype).itemsize
    o_bytes = out_dtype.itemsize

    # ---- Generation-aware VMEM budget --------------------------------------
    try:
        vmem_cap = int(pltpu.get_tpu_info().vmem_capacity_bytes)
    except Exception:
        vmem_cap = 64 * 1024 * 1024           # conservative: v7x per-TensorCore
    budget = (vmem_cap * 3) // 4              # 48 MiB (v7x) / 96 MiB (v5e/v6e)
    vmem_limit = max(budget, min((vmem_cap * 7) // 8, vmem_cap - (4 << 20)))
    two_core_hint = vmem_cap <= 96 * 1024 * 1024   # v7x: 64 MiB/TC, 2 TCs/chip

    M8 = _round_up(M, 8)
    acc_in_out = out_dtype == jnp.float32

    # ---- Tile-size fitting ---------------------------------------------------
    # Row-tile cap: larger on 128-MiB-VMEM parts; on 2-core parts keep at least
    # 2 row tiles so the "parallel" axis actually shards across TensorCores.
    tm_cap = 512 if vmem_cap > (100 << 20) else 256
    if two_core_hint and M8 >= 16:
        tm_cap = min(tm_cap, _round_up(_cdiv(M, 2), 8))
    tm_cap = max(8, min(_round_up(tm_cap, 8), M8))
    tm_cands = sorted({min(tm_cap, c) for c in (512, 256, 128, 64, 32, 16, 8)},
                      reverse=True)
    tk_cands = [t for t in (2048, 1024, 512, 256, 128) if K % t == 0]

    def est_stationary(t):
        # (possibly double-buffered) weight + x double-buffer
        # + 2 double-buffered outputs + transient f32 logits.
        return (2 * N * K * w_bytes + 2 * t * K * x_bytes
                + 2 * 2 * t * N * o_bytes + t * N * 4)

    def est_ktiled(t, tkk):
        return (2 * t * tkk * x_bytes + 2 * N * tkk * w_bytes
                + 2 * 2 * t * N * o_bytes
                + (0 if acc_in_out else t * N * 4)   # acc scratch
                + t * N * 4)                         # transient f32 contrib

    stat_tm = next((t for t in tm_cands if est_stationary(t) <= budget), None)
    kt = None
    for t in tm_cands:                 # keep tm large; shrink tk first
        for tkk in tk_cands:
            if est_ktiled(t, tkk) <= budget:
                kt = (t, tkk)
                break
        if kt is not None:
            break

    if stat_tm is not None and (kt is None or stat_tm >= kt[0]):
        auto_tm, auto_tk = stat_tm, K          # weight-stationary fast path
    elif kt is not None:
        auto_tm, auto_tk = kt                  # K-tiled, large tm preferred
    else:
        # Nothing fits the estimate; fall back to the smallest legal tiles.
        # TODO(synk): vocab-scale N would want an N-tiled online-softmax
        # variant; N is intentionally kept untiled here.
        auto_tm, auto_tk = 8, (tk_cands[-1] if tk_cands else K)

    if tm is None:
        tm = auto_tm
    tm = max(8, min(_round_up(tm, 8), M8))
    if tk is None:
        tk = auto_tk
    tk = min(tk, K)
    if tk < K:
        assert K % tk == 0 and tk % 128 == 0, "tk must be a 128-multiple divisor of K"
    stationary = tk == K

    # ---- Grid / specs ---------------------------------------------------------
    # No M padding: the row grid uses cdiv.  A trailing partial row block reads
    # unspecified rows, which is safe because the softmax is row-independent and
    # out-of-bounds output rows are never written back.
    m_blocks = _cdiv(M, tm)

    cost = pl.CostEstimate(
        flops=2 * M * N * K,
        transcendentals=M * N + 2 * M,      # exp per logit; log + recip per row
        bytes_accessed=(M * K * x_bytes + K * N * w_bytes + 2 * M * N * o_bytes),
    )

    if stationary:
        grid = (m_blocks,)
        in_specs = [
            pl.BlockSpec((tm, K), lambda i: (i, 0)),
            pl.BlockSpec((N, K), lambda i: (0, 0)),    # constant: fetched once
        ]
        out_specs = [
            pl.BlockSpec((tm, N), lambda i: (i, 0)),
            pl.BlockSpec((tm, N), lambda i: (i, 0)),
        ]
        scratch_shapes = []
        kernel = _stationary_kernel
        dim_sem = ("parallel",)
    else:
        grid = (m_blocks, K // tk)
        in_specs = [
            pl.BlockSpec((tm, tk), lambda i, k: (i, k)),
            pl.BlockSpec((N, tk), lambda i, k: (0, k)),
        ]
        out_specs = [
            pl.BlockSpec((tm, N), lambda i, k: (i, 0)),
            pl.BlockSpec((tm, N), lambda i, k: (i, 0)),
        ]
        if acc_in_out:
            scratch_shapes = []
            kernel = _ktiled_kernel_acc_in_out
        else:
            scratch_shapes = [pltpu.VMEM((tm, N), jnp.float32)]
            kernel = _ktiled_kernel_scratch
        dim_sem = ("parallel", "arbitrary")

    probs, log_probs = pl.pallas_call(
        kernel,
        out_shape=(
            jax.ShapeDtypeStruct((M, N), out_dtype),
            jax.ShapeDtypeStruct((M, N), out_dtype),
        ),
        grid_spec=pltpu.PrefetchScalarGridSpec(
            num_scalar_prefetch=0,
            grid=grid,
            in_specs=in_specs,
            out_specs=out_specs,
            scratch_shapes=scratch_shapes,
        ),
        compiler_params=pltpu.CompilerParams(
            dimension_semantics=dim_sem,
            vmem_limit_bytes=int(vmem_limit),
        ),
        cost_estimate=cost,
    )(feature_in, feature_weight)

    return probs, log_probs


# ---------------------------------------------------------------------------
# Reference + self-test
# ---------------------------------------------------------------------------

def linear_softmax_ref(feature_in, feature_weight):
    logits = jax.lax.dot_general(
        feature_in.astype(jnp.float32), feature_weight.astype(jnp.float32),
        dimension_numbers=(((1,), (1,)), ((), ())),
        precision=jax.lax.Precision.HIGHEST,
    )
    log_probs = jax.nn.log_softmax(logits, axis=-1)
    probs = jax.nn.softmax(log_probs, axis=-1)
    return probs, log_probs


if __name__ == "__main__":
    key = jax.random.PRNGKey(0)
    k1, k2 = jax.random.split(key)

    # Tolerances allow for MXU f32 matmul pass-count differences vs the
    # HIGHEST-precision XLA reference.
    ATOL = RTOL = 2e-3

    # --- Test 1: small shape, weight-stationary path (K not a 128-multiple). ---
    M, K, N = 16, 32, 128
    feature_in = jax.random.normal(k1, (M, K), dtype=jnp.float32)
    feature_weight = jax.random.normal(k2, (N, K), dtype=jnp.float32) * 0.1

    probs, log_probs = linear_softmax(feature_in, feature_weight)
    jax.block_until_ready((probs, log_probs))

    probs_r, logp_r = linear_softmax_ref(feature_in, feature_weight)
    assert jnp.allclose(probs, probs_r, atol=ATOL, rtol=RTOL), "probs mismatch"
    assert jnp.allclose(log_probs, logp_r, atol=ATOL, rtol=RTOL), "log_softmax mismatch"
    assert jnp.allclose(jnp.sum(probs, axis=-1), 1.0, atol=1e-4), "rows must sum to 1"

    # --- Test 2: K-tiled path, logits accumulated in the f32 output block. ---
    k3, k4 = jax.random.split(k2)
    M2, K2, N2 = 32, 256, 256
    x2 = jax.random.normal(k3, (M2, K2), dtype=jnp.float32)
    w2 = jax.random.normal(k4, (N2, K2), dtype=jnp.float32) * 0.05

    probs2, logp2 = linear_softmax(x2, w2, tm=16, tk=128)
    jax.block_until_ready((probs2, logp2))

    probs2_r, logp2_r = linear_softmax_ref(x2, w2)
    assert jnp.allclose(probs2, probs2_r, atol=ATOL, rtol=RTOL), "probs mismatch (ktiled)"
    assert jnp.allclose(logp2, logp2_r, atol=ATOL, rtol=RTOL), "log_softmax mismatch (ktiled)"
    assert jnp.allclose(jnp.sum(probs2, axis=-1), 1.0, atol=1e-4), "rows must sum to 1 (ktiled)"

    print("KERNEL_OK")
</pallas_src>

<mosaic_0001>
module attributes {stable_mosaic.version = 11 : i64} {
  func.func @_stationary_kernel(%arg0: i32, %arg1: memref<8x32xf32, #tpu.memory_space<vmem>>, %arg2: memref<128x32xf32, #tpu.memory_space<vmem>>, %arg3: memref<8x128xf32, #tpu.memory_space<vmem>>, %arg4: memref<8x128xf32, #tpu.memory_space<vmem>>) attributes {dimension_semantics = [#tpu.dimension_semantics<parallel>], iteration_bounds = array<i64: 2>, scalar_prefetch = 0 : i64, scratch_operands = 0 : i64, tpu.core_type = #tpu.core_type<tc>, window_params = [{transform_indices = @transform_0, window_bounds = array<i64: 8, 32>}, {pipeline_mode = #tpu.pipeline_mode<synchronous>, transform_indices = @transform_1, window_bounds = array<i64: 128, 32>}, {transform_indices = @transform_2, window_bounds = array<i64: 8, 128>}, {transform_indices = @transform_3, window_bounds = array<i64: 8, 128>}]} {
    %c0 = arith.constant 0 : index
    %c0_0 = arith.constant 0 : index
    %0 = vector.load %arg1[%c0, %c0_0] : memref<8x32xf32, #tpu.memory_space<vmem>>, vector<8x32xf32>
    %c0_1 = arith.constant 0 : index
    %c0_2 = arith.constant 0 : index
    %1 = vector.load %arg2[%c0_1, %c0_2] : memref<128x32xf32, #tpu.memory_space<vmem>>, vector<128x32xf32>
    %cst = arith.constant dense<0.000000e+00> : vector<8x128xf32>
    %2 = tpu.matmul %0, %1, %cst {dimension_numbers = #tpu.dot_dimension_numbers<[1], [1], [0], [0], [0, 0, 1, 0], [], []>} : vector<8x32xf32>, vector<128x32xf32>, vector<8x128xf32> -> vector<8x128xf32>
    %cst_3 = arith.constant dense<0xFF800000> : vector<8xf32>
    %3 = vector.multi_reduction <maximumf>, %2, %cst_3 [1] : vector<8x128xf32> to vector<8xf32>
    %4 = vector.shape_cast %3 : vector<8xf32> to vector<8x1xf32>
    %5 = vector.broadcast %4 : vector<8x1xf32> to vector<8x128xf32>
    %6 = arith.subf %2, %5 : vector<8x128xf32>
    %7 = math.exp %6 : vector<8x128xf32>
    %cst_4 = arith.constant dense<0.000000e+00> : vector<8xf32>
    %8 = vector.multi_reduction <add>, %7, %cst_4 [1] : vector<8x128xf32> to vector<8xf32>
    %9 = vector.shape_cast %8 : vector<8xf32> to vector<8x1xf32>
    %10 = math.log %9 : vector<8x1xf32>
    %11 = vector.broadcast %10 : vector<8x1xf32> to vector<8x128xf32>
    %12 = arith.subf %6, %11 : vector<8x128xf32>
    %13 = tpu.reciprocal %9 {approx = true} : vector<8x1xf32> -> vector<8x1xf32>
    %14 = arith.mulf %9, %13 : vector<8x1xf32>
    %cst_5 = arith.constant 2.000000e+00 : f32
    %15 = vector.broadcast %cst_5 : f32 to vector<8x1xf32>
    %16 = arith.subf %15, %14 : vector<8x1xf32>
    %17 = arith.mulf %13, %16 : vector<8x1xf32>
    %18 = vector.broadcast %17 : vector<8x1xf32> to vector<8x128xf32>
    %19 = arith.mulf %7, %18 : vector<8x128xf32>
    %c0_6 = arith.constant 0 : index
    %c0_7 = arith.constant 0 : index
    %20 = vector.load %arg3[%c0_6, %c0_7] : memref<8x128xf32, #tpu.memory_space<vmem>>, vector<8x128xf32>
    tpu.vector_store %arg3[%c0_6, %c0_7], %19 {strides = array<i32>} : memref<8x128xf32, #tpu.memory_space<vmem>>, vector<8x128xf32>,
    %c0_8 = arith.constant 0 : index
    %c0_9 = arith.constant 0 : index
    %21 = vector.load %arg4[%c0_8, %c0_9] : memref<8x128xf32, #tpu.memory_space<vmem>>, vector<8x128xf32>
    tpu.vector_store %arg4[%c0_8, %c0_9], %12 {strides = array<i32>} : memref<8x128xf32, #tpu.memory_space<vmem>>, vector<8x128xf32>,
    return
  }
  func.func @transform_0(%arg0: i32) -> (i32, i32) {
    %c0_i32 = arith.constant 0 : i32
    %c0_i32_0 = arith.constant 0 : i32
    return %arg0, %c0_i32 : i32, i32
  }
  func.func @transform_1(%arg0: i32) -> (i32, i32) {
    %c0_i32 = arith.constant 0 : i32
    %c0_i32_0 = arith.constant 0 : i32
    %c0_i32_1 = arith.constant 0 : i32
    return %c0_i32, %c0_i32_0 : i32, i32
  }
  func.func @transform_2(%arg0: i32) -> (i32, i32) {
    %c0_i32 = arith.constant 0 : i32
    %c0_i32_0 = arith.constant 0 : i32
    return %arg0, %c0_i32 : i32, i32
  }
  func.func @transform_3(%arg0: i32) -> (i32, i32) {
    %c0_i32 = arith.constant 0 : i32
    %c0_i32_0 = arith.constant 0 : i32
    return %arg0, %c0_i32 : i32, i32
  }
}

</mosaic_0001>

<bundles_post_ra>
// kernel: tpu_custom_call.1
= control target key start
LH: loop header
LB: loop body
LE: loop exit
PB: predicated region body
PF: predicated region fallthrough
CT: control target
= control target key end

     0   :  { %9 = vsyncpa [#allocation3], 0  ;;  %s900_s0 = inlined_call_operand.vmem [shape: f32[16,32], index: 0, kind: input, shape index: {}]   ;;  %s901_s1 = inlined_call_operand.vmem [shape: f32[128,32], index: 1, kind: input, shape index: {}]   ;;  %s902_s2 = inlined_call_operand.hbm [shape: f32[16,128], index: 2, kind: output, shape index: {0}]   ;;  %s903_s3 = inlined_call_operand.hbm [shape: f32[16,128], index: 3, kind: output, shape index: {1}]  }
   0x1   :  { %11 = vsyncpa [#allocation3 + $0x1], 0 }
   0x2   :  { %12 = vsyncpa [#allocation5], 0 }
   0x3   :  { %14 = vsyncpa [#allocation5 + $0x1], 0  ;;  %s706_s12 = smov 0   ;;  %s708_s13 = smov 0  }
   0x4   :  { %s710_s14 = smov 0   ;;  %s712_s15 = smov 0  }
   0x5 LB: > { %s727_s16 = sadd.s32 4294967295, %s680_s15   ;;  %s456_s17 = sadd.s32 4294967294, %s680_s15   ;;  %s680_s15 = sphi %s712_s15, %s909_s15   ;;  %s676_s14 = sphi %s710_s14, %s908_s14   ;;  %s672_s13 = sphi %s708_s13, %s907_s13   ;;  %s668_s12 = sphi %s706_s12, %s906_s12  }
   0x6   : > { %s731_s18 = sadd.s32 1, %s680_s15   ;;  %s74_s19 = sadd.s32 1, %s676_s14 }
   0x7   : > { %s71_s20 = ssub.s32 %s680_s15, %s731_s18  ;;  %p84_p0 = scmp.ne.s32.totalorder %s676_s14, %s672_s13 }
   0x8   : > { %p72_p1 = scmp.eq.s32.totalorder %s71_s20, 0  ;;  %p85_p2 = scmp.eq.s32.totalorder %s727_s16, 1 }
   0x9   : > { %p90_p3 = scmp.ne.s32.totalorder %s672_s13, %s668_s12  ;;  %p91_p4 = scmp.eq.s32.totalorder %s456_s17, 1 }
   0xa   : > { %s742_s21 = scalar_select %p72_p1, %s676_s14, %s74_s19  }
   0xb   : > { %p744_p5 = por %p85_p2, %p84_p0  ;;  %p748_p6 = por %p91_p4, %p90_p3 }
   0xc   : > { %p459_p7 = scmp.ge.s32.totalorder %s680_s15, 1  ;;  %p145_p8 = scmp.lt.s32.totalorder %s680_s15, 3 }
   0xe   : > { %p146_p9 = pnand %p459_p7, %p145_p8 }
   0xf   : > { %p173_p10 = scmp.lt.s32.totalorder (!%p146_p9), %s727_s16, 1  ;;  %s825_s25 = sand.u32 (!%p146_p9), 1, %s672_s13  }
  0x10   : > { %149 = sbr.rel (%p146_p9) target bundleno = 627 (0x273), region = 28  ;;  %s460_s26 = sshll.u32 (!%p146_p9), %s825_s25, 3 }
  0x11   : > { %s482_s27 = sshll.u32 (!%p146_p9), %s727_s16, 7  ;;  %s172_s28 = scalar_lea.vmem (!%p146_p9), [#allocation4], %s460_s26 }
  0x12   : > { %s365_s29 = sshll.u32 (!%p146_p9), %s172_s28, 4  ;;  %s834_s5 = scalar_lea.hbm (!%p146_p9), %s903_s3, %s482_s27  ;;  %s836_s29 = int_to_ptr.vmem [resolvable:$true] %s365_s29 }
  0x13   : > { %s838_s6 = scalar_lea.vmem (!%p146_p9), [#allocation2], %s460_s26  ;;  %s339_s8 = scalar_lea.sflag (!%p146_p9), [#allocation5], %s825_s25 }
  0x14   : > { %s590_s9 = scalar_lea.vmem (!%p146_p9), %s836_s29, 128 }
  0x15   : > { %v193_v0 = vld [vmem:[%s901_s1 + $0x78] sm:$0xff]  ;;  %vm194_vm0 = vcmask 261120   ;;  %v682_v1 = vmov 0.0   ;;  %vm683_vm1 = vmmov 0   ;;  %v192_v2 = vld [vmem:[%s901_s1 + $0x70] sm:$0xff]  ;;  %v191_v3 = vld [vmem:[%s901_s1 + $0x68] sm:$0xff]  ;;  %p591_p11 = scmp.ne.s32.totalorder %s836_s29, %s590_s9 }
  0x16   : > { %503 = vmatprep.subr.mxu0 %v682_v1  ;;  %535 = vmatprep.mubr.msk.f32.mxu0 %vm683_vm1, %v682_v1  ;;  %v190_v4 = vld [vmem:[%s901_s1 + $0x60] sm:$0xff]  ;;  %v189_v5 = vld [vmem:[%s901_s1 + $0x58] sm:$0xff]  ;;  %v188_v6 = vld [vmem:[%s901_s1 + $0x50] sm:$0xff]  ;;  %s174_s7 = scalar_select %p173_p10, %s727_s16, 1 }
  0x17   : > { %504 = vmatpush3.xpose.msk.msra.mxu0 %vm194_vm0, %v193_v0  ;;  %v187_v7 = vld [vmem:[%s901_s1 + $0x48] sm:$0xff]  ;;  %v186_v8 = vld [vmem:[%s901_s1 + $0x40] sm:$0xff]  ;;  %v185_v9 = vld [vmem:[%s901_s1 + $0x38] sm:$0xff]  ;;  %p592_p12 = pnand %p591_p11, %p744_p5 }
  0x18   : > { %505 = vmatprep.subr.mxu0 %v682_v1  ;;  %v184_v10 = vld [vmem:[%s901_s1 + $0x30] sm:$0xff]  ;;  %v183_v11 = vld [vmem:[%s901_s1 + $0x28] sm:$0xff]  ;;  %v182_v12 = vld [vmem:[%s901_s1 + $0x20] sm:$0xff]  ;;  %s462_s10 = sshll.u32 %s174_s7, 3  ;;  %s352_s7 = sshll.u32 %s838_s6, 4  ;;  %s353_s7 = int_to_ptr.vmem [resolvable:$true] %s352_s7 }
  0x19   : > { %v181_v13 = vld [vmem:[%s901_s1 + $0x18] sm:$0xff]  ;;  %v180_v14 = vld [vmem:[%s901_s1 + $0x10] sm:$0xff]  ;;  %v179_v15 = vld [vmem:[%s901_s1 + $0x8] sm:$0xff]  ;;  %s176_s24 = scalar_lea.vmem %s900_s0, %s462_s10  ;;  %p593_p13 = pneg %p592_p12 }
  0x1a   : > { %v178_v16 = vld [vmem:[%s901_s1] sm:$0xff]  ;;  %s684_s10 = smov [#allocation4]  }
  0x1b   : > { %506 = vmatpush3.xpose.msk.msra.mxu0 %vm194_vm0, %v192_v2  ;;  %v177_v17 = vld [vmem:[%s176_s24] sm:$0xff]  ;;  %s594_s11 = sshll.u32 %s684_s10, 4  ;;  %s595_s11 = int_to_ptr.vmem [resolvable:$false] %s594_s11 }
  0x1c   : > { %507 = vmatprep.subr.mxu0 %v682_v1  ;;  %s596_s17 = scalar_lea.vmem %s595_s11, 256  ;;  %p597_p0 = scmp.lt.s32.totalorder %s836_s29, %s595_s11 }
  0x1d   : > { %p598_p1 = scmp.lt.s32.totalorder %s596_s17, %s590_s9 }
  0x1f   : > { %508 = vmatpush3.xpose.msk.msra.mxu0 %vm194_vm0, %v191_v3  ;;  %p599_p2 = por %p598_p1, %p597_p0 }
  0x20   : > { %509 = vmatprep.subr.mxu0 %v682_v1 }
  0x21   : > { %p600_p3 = pnand %p599_p2, %p593_p13 }
  0x23   : > { %510 = vmatpush3.xpose.msk.msra.mxu0 %vm194_vm0, %v190_v4 }
  0x24   : > { %511 = vmatprep.subr.mxu0 %v682_v1 }
  0x27   : > { %512 = vmatpush3.xpose.msk.msra.mxu0 %vm194_vm0, %v189_v5 }
  0x28   : > { %513 = vmatprep.subr.mxu0 %v682_v1 }
  0x2b   : > { %514 = vmatpush3.xpose.msk.msra.mxu0 %vm194_vm0, %v188_v6 }
  0x2c   : > { %515 = vmatprep.subr.mxu0 %v682_v1 }
  0x2f   : > { %516 = vmatpush3.xpose.msk.msra.mxu0 %vm194_vm0, %v187_v7 }
  0x30   : > { %517 = vmatprep.subr.mxu0 %v682_v1 }
  0x33   : > { %518 = vmatpush3.xpose.msk.msra.mxu0 %vm194_vm0, %v186_v8 }
  0x34   : > { %519 = vmatprep.subr.mxu0 %v682_v1 }
  0x37   : > { %520 = vmatpush3.xpose.msk.msra.mxu0 %vm194_vm0, %v185_v9 }
  0x38   : > { %521 = vmatprep.subr.mxu0 %v682_v1 }
  0x3b   : > { %522 = vmatpush3.xpose.msk.msra.mxu0 %vm194_vm0, %v184_v10 }
  0x3c   : > { %523 = vmatprep.subr.mxu0 %v682_v1 }
  0x3f   : > { %524 = vmatpush3.xpose.msk.msra.mxu0 %vm194_vm0, %v183_v11 }
  0x40   : > { %525 = vmatprep.subr.mxu0 %v682_v1 }
  0x43   : > { %526 = vmatpush3.xpose.msk.msra.mxu0 %vm194_vm0, %v182_v12 }
  0x44   : > { %527 = vmatprep.subr.mxu0 %v682_v1 }
  0x47   : > { %528 = vmatpush3.xpose.msk.msra.mxu0 %vm194_vm0, %v181_v13 }
  0x48   : > { %529 = vmatprep.subr.mxu0 %v682_v1 }
  0x4b   : > { %530 = vmatpush3.xpose.msk.msra.mxu0 %vm194_vm0, %v180_v14 }
  0x4c   : > { %531 = vmatprep.subr.mxu0 %v682_v1 }
  0x4f   : > { %532 = vmatpush3.xpose.msk.msra.mxu0 %vm194_vm0, %v179_v15 }
  0x50   : > { %533 = vmatprep.subr.mxu0 %v682_v1 }
  0x53   : > { %534 = vmatpush3.xpose.msk.msra.mxu0 %vm194_vm0, %v178_v16 }
  0x56   : > { %536 = vmatmul.mubr.msk.f32.vlgmr.msra.gmra.mxu0 %vm194_vm0, %v177_v17 }
 0x116   : > { %v312_v18 = vpop.f32.mrf.mxu0 }
 0x117   : > { %316 = vmax.xlane.f32.xlu0 %v312_v18 }
 0x118   : > { %v537_v19 = vpop.f32.mrf.mxu0 }
 0x1a0   : > { %v317_v20 = vpop.xlane.xlu0 %316 }
 0x1a1   : > { %v318_v21 = vsub.f32 %v312_v18, %v317_v20 }
 0x1a3   : > { %v319_v22 = vmul.f32 1.442695, %v318_v21 }
 0x1a5   : > { %584 = vpow2.f32 %v319_v22 }
 0x1b2   : > { %v585_v23 = vpop.eup %584 }
 0x1b3   : > { %321 = vadd.xlane.f32.xlu0 %v585_v23 }
 0x23c   : > { %v322_v24 = vpop.xlane.xlu0 %321 }
 0x23d   : > { %586 = vlog2.f32 %v322_v24 }
 0x23e   : > { %588 = vrcp.f32 %v322_v24 }
 0x24a   : > { %v587_v25 = vpop.eup %586 }
 0x24b   : > { %v589_v26 = vpop.eup %588  ;;  %v324_v27 = vmul.f32 0.6931472, %v587_v25 }
 0x24c   : > { %v327_v28 = vmul.f32 %v589_v26, %v322_v24 }
 0x24d   : > { %v325_v29 = vsub.f32 %v318_v21, %v324_v27 }
 0x24e   : > { %v328_v30 = vsub.f32 2.0, %v327_v28 }
 0x24f   : > { %332 = vst [vmem:[%s172_s28] sm:$0xff] %v325_v29 }
 0x250   : > { %v329_v31 = vmul.f32 %v589_v26, %v328_v30 }
 0x251   : > { %603 = shalt.err (!%p600_p3)
}
 0x252   : > { %s604_s19 = scalar_lea.hbm %s834_s5, 128  ;;  %s608_s26 = scalar_lea.hbm %s903_s3, 256 }
 0x253   : > { %p605_p4 = scmp.ne.s32.totalorder %s834_s5, %s604_s19  ;;  %p609_p9 = scmp.lt.s32.totalorder %s834_s5, %s903_s3 }
 0x254   : > { %p610_p10 = scmp.lt.s32.totalorder %s608_s26, %s604_s19 }
 0x255   : > { %p606_p7 = pnand %p605_p4, %p744_p5 }
 0x256   : > { %p611_p11 = por %p610_p10, %p609_p9 }
 0x257   : > { %p607_p8 = pneg %p606_p7 }
 0x259   : > { %p612_p12 = pnand %p611_p11, %p607_p8 }
 0x25b   : > { %615 = shalt.err (!%p612_p12)
}
 0x25c   : > { %539 = dma.vmem_to_hbm [thread:$0]  (%p744_p5), %s836_s29, 128, %s834_s5, %s339_s8   ;;  %v330_v32 = vmul.f32 %v585_v23, %v329_v31 }
 0x25d   : > { %s350_s10 = scalar_lea.hbm %s902_s2, %s482_s27  ;;  %s334_s11 = scalar_lea.sflag [#allocation3], %s825_s25 }
 0x25e   : > { %331 = vst [vmem:[%s838_s6] sm:$0xff] %v330_v32  ;;  %s616_s17 = scalar_lea.vmem %s353_s7, 128  ;;  %s685_s19 = smov [#allocation2]  }
 0x25f   : > { %p617_p13 = scmp.ne.s32.totalorder %s353_s7, %s616_s17  ;;  %s620_s20 = sshll.u32 %s685_s19, 4  ;;  %s621_s20 = int_to_ptr.vmem [resolvable:$false] %s620_s20 }
 0x260   : > { %s622_s24 = scalar_lea.vmem %s621_s20, 256  ;;  %p623_p2 = scmp.lt.s32.totalorder %s353_s7, %s621_s20 }
 0x261   : > { %p618_p0 = pnand %p617_p13, %p744_p5  ;;  %p624_p3 = scmp.lt.s32.totalorder %s622_s24, %s616_s17 }
 0x263   : > { %p619_p1 = pneg %p618_p0  ;;  %p625_p4 = por %p624_p3, %p623_p2 }
 0x265   : > { %p626_p7 = pnand %p625_p4, %p619_p1 }
 0x267   : > { %629 = shalt.err (!%p626_p7)
}
 0x268   : > { %s630_s16 = scalar_lea.hbm %s350_s10, 128  ;;  %s634_s29 = scalar_lea.hbm %s902_s2, 256 }
 0x269   : > { %p631_p8 = scmp.ne.s32.totalorder %s350_s10, %s630_s16  ;;  %p635_p11 = scmp.lt.s32.totalorder %s350_s10, %s902_s2 }
 0x26a   : > { %p636_p12 = scmp.lt.s32.totalorder %s634_s29, %s630_s16 }
 0x26b   : > { %p632_p9 = pnand %p631_p8, %p744_p5 }
 0x26c   : > { %p637_p13 = por %p636_p12, %p635_p11 }
 0x26d   : > { %p633_p10 = pneg %p632_p9 }
 0x26f   : > { %p638_p0 = pnand %p637_p13, %p633_p10 }
 0x271   : > { %641 = shalt.err (!%p638_p0)
}
 0x272   : > { %538 = dma.vmem_to_hbm [thread:$0]  (%p744_p5), %s353_s7, 128, %s350_s10, %s334_s11  }
 0x273 PF: > { %p549_p1 = scmp.ge.s32.totalorder %s680_s15, 2  ;;  %s377_s8 = sand.u32 1, %s668_s12  }
 0x274   : > { %s378_s26 = scalar_lea.sflag [#allocation3], %s377_s8 }
 0x275   : > { %p543_p2 = pnand %p549_p1, %p748_p6 }
 0x277   : > { %p544_p3 = pneg %p543_p2 }
 0x279   : > { %659 = dma.done.wait (%p544_p3), %s378_s26, 128  }
 0x27a   : > { %661 = vsyncadd (%p544_p3), %s378_s26, 4294967168  ;;  %s387_s28 = scalar_lea.sflag [#allocation5], %s377_s8 }
 0x27b   : > { %663 = dma.done.wait (%p544_p3), %s387_s28, 128  }
 0x27c   : > { %665 = vsyncadd (%p544_p3), %s387_s28, 4294967168  ;;  %p17_p5 = scmp.ge.s32.totalorder %s731_s18, 4   ;;  %s906_s12 = smov %s672_s13 }
 0x27d   : > { %s907_s13 = smov %s676_s14  ;;  %s908_s14 = smov %s742_s21 }
 0x27e   : > { %s909_s15 = smov %s731_s18  ;;  %19 = sbr.rel (!%p17_p5) target bundleno = 5 (0x5), region = 80 }
 0x283   :  { %392 = vsyncpa [#allocation3], 1 }
 0x284   :  { %394 = vsyncpa [#allocation3 + $0x1], 1 }
 0x285   :  { %395 = vsyncpa [#allocation5], 1 }
 0x286   :  { %397 = vsyncpa [#allocation5 + $0x1], 1 }

</bundles_post_ra>
